<compile_context>
chip_gen: v5e
topology: v5e:2x2
jax: 0.10.0
libtpu: 0.0.40
codegen_flags: <defaults>
</compile_context>

<pallas_src>
import functools

import jax
import jax.numpy as jnp
from jax.experimental import pallas as pl
from jax.experimental.pallas import tpu as pltpu


def _round_up(n, m):
    return (n + m - 1) // m * m


def _cdiv(a, b):
    return (a + b - 1) // b


def _mlp_kernel(x_ref, w1_ref, b1_ref, w2_ref, b2_ref, o_ref):
    # x arrives as f32 straight from HBM (no wrapper pad/cast pass); the bf16
    # cast is cheap VPU work hidden under the DMA roofline.
    x = x_ref[...].astype(w1_ref.dtype)
    # Linear(in -> hidden): bf16 operands, f32 accumulation on the MXU.
    h = jnp.dot(x, w1_ref[...], preferred_element_type=jnp.float32)
    # Bias + ReLU in f32 on the VPU (cheap epilogue).
    h = jnp.maximum(h + b1_ref[...], 0.0)
    # Linear(hidden -> out): cast activation back to bf16 for the MXU.
    out = jnp.dot(h.astype(w2_ref.dtype), w2_ref[...],
                  preferred_element_type=jnp.float32)
    # Lane-dense (128-wide) bf16 store; padding columns are sliced off outside.
    o_ref[...] = (out + b2_ref[...]).astype(o_ref.dtype)


def prepare_params(w1, b1, w2, b2):
    """One-time weight prep (module "init"), hoisted out of the forward path.

    Casts weights to bf16 (halves weight DMA, 2x MXU rate) and zero-pads the
    hidden/output feature dims to 128-lane multiples so stores are lane-dense.
    Biases stay f32 and are added after the f32-accumulated matmuls.
    """
    in_f, hidden = w1.shape
    out_f = w2.shape[1]
    hid_p = _round_up(hidden, 128)   # 256 -> 256
    out_p = _round_up(out_f, 128)    # 10  -> 128 (lane-dense output)
    bf16, f32 = jnp.bfloat16, jnp.float32

    w1_p = jnp.zeros((in_f, hid_p), bf16).at[:, :hidden].set(w1.astype(bf16))
    b1_p = jnp.zeros((1, hid_p), f32).at[:, :hidden].set(
        jnp.reshape(b1, (1, hidden)).astype(f32))
    w2_p = jnp.zeros((hid_p, out_p), bf16).at[:hidden, :out_f].set(w2.astype(bf16))
    b2_p = jnp.zeros((1, out_p), f32).at[:, :out_f].set(
        jnp.reshape(b2, (1, out_f)).astype(f32))
    return w1_p, b1_p, w2_p, b2_p


@functools.partial(jax.jit, static_argnames=("out_features", "batch_tile"))
def my_sequential_forward(x, w1_p, b1_p, w2_p, b2_p, *, out_features,
                          batch_tile=1024):
    """Fused relu(x @ w1 + b1) @ w2 + b2  ==  MySequential(Linear, ReLU, Linear).

    x: (batch, in_features) f32.  w1_p/b1_p/w2_p/b2_p from prepare_params().
    Returns (batch, out_features) f32.
    """
    batch, in_f = x.shape
    hid_p = w1_p.shape[1]
    out_p = w2_p.shape[1]
    bf16 = jnp.bfloat16

    if batch <= 256:
        # Whole problem fits comfortably in VMEM: no grid -> no per-step grid
        # overhead, single DMA per operand, x fed as-is (no pad / cast copy).
        out = pl.pallas_call(
            _mlp_kernel,
            out_shape=jax.ShapeDtypeStruct((batch, out_p), bf16),
            in_specs=[pl.BlockSpec(memory_space=pltpu.MemorySpace.VMEM)] * 5,
            out_specs=pl.BlockSpec(memory_space=pltpu.MemorySpace.VMEM),
        )(x, w1_p, b1_p, w2_p, b2_p)
    else:
        # Batch-tiled grid, x consumed in place (f32 read only). Ragged batches
        # use a partial last tile: OOB rows are read as garbage but only feed
        # output rows whose writes are masked. Weights/biases use constant
        # index maps so they are DMA'd once and stay VMEM-resident across
        # tiles. Always >=2 tiles so v7x's 2 TensorCores both get work; tiles
        # capped at `batch_tile` (1024 rows ~ 7-9 MiB double-buffered, inside
        # v5e's 16 MiB scoped-VMEM default).
        tb = min(batch_tile, _round_up(_cdiv(batch, 2), 8))
        num_tiles = _cdiv(batch, tb)
        out = pl.pallas_call(
            _mlp_kernel,
            out_shape=jax.ShapeDtypeStruct((batch, out_p), bf16),
            grid=(num_tiles,),
            in_specs=[
                pl.BlockSpec((tb, in_f), lambda i: (i, 0)),
                pl.BlockSpec((in_f, hid_p), lambda i: (0, 0)),
                pl.BlockSpec((1, hid_p), lambda i: (0, 0)),
                pl.BlockSpec((hid_p, out_p), lambda i: (0, 0)),
                pl.BlockSpec((1, out_p), lambda i: (0, 0)),
            ],
            out_specs=pl.BlockSpec((tb, out_p), lambda i: (i, 0)),
            compiler_params=pltpu.CompilerParams(
                dimension_semantics=("parallel",)),
        )(x, w1_p, b1_p, w2_p, b2_p)

    # Slice off the lane-padding columns; upcast logits back to f32.
    return out[:, :out_features].astype(jnp.float32)


def _init_linear(key, in_features, out_features, dtype=jnp.float32):
    """Deterministic init mimicking PyTorch nn.Linear default:
    U(-1/sqrt(fan_in), 1/sqrt(fan_in)). Weight returned as (in, out)."""
    kw, kb = jax.random.split(key)
    bound = 1.0 / (in_features ** 0.5)
    w = jax.random.uniform(kw, (in_features, out_features), dtype,
                           minval=-bound, maxval=bound)
    b = jax.random.uniform(kb, (1, out_features), dtype,
                           minval=-bound, maxval=bound)
    return w, b


def _reference(x, w1, b1, w2, b2):
    # Same bf16 operand / output rounding as the kernel, f32 accumulation.
    bf = lambda a: a.astype(jnp.bfloat16).astype(jnp.float32)
    h = jnp.maximum(bf(x) @ bf(w1) + b1, 0.0)
    out = bf(h) @ bf(w2) + b2
    return out.astype(jnp.bfloat16).astype(jnp.float32)


if __name__ == "__main__":
    key = jax.random.PRNGKey(0)
    kx, k1, k2, kx2, kx3 = jax.random.split(key, 5)

    batch, in_features, hidden, num_classes = 2, 784, 256, 10

    x = jax.random.uniform(kx, (batch, in_features), jnp.float32)
    w1, b1 = _init_linear(k1, in_features, hidden)
    w2, b2 = _init_linear(k2, hidden, num_classes)

    # One-time weight prep ("module init") — hoisted out of every forward call.
    params = prepare_params(w1, b1, w2, b2)
    fwd = functools.partial(my_sequential_forward, out_features=num_classes)

    # Small-batch (tutorial) case: single VMEM block, no grid.
    out = jax.block_until_ready(fwd(x, *params))
    ref = _reference(x, w1, b1, w2, b2)
    assert out.shape == (batch, num_classes), out.shape
    assert jnp.allclose(out, ref, atol=1e-2, rtol=1e-2), "small-batch mismatch"

    # Large-batch case: batch-tiled grid (2 tiles -> both TCs on v7x).
    big_batch = 512
    xb = jax.random.uniform(kx2, (big_batch, in_features), jnp.float32)
    out_b = jax.block_until_ready(fwd(xb, *params))
    ref_b = _reference(xb, w1, b1, w2, b2)
    assert out_b.shape == (big_batch, num_classes), out_b.shape
    assert jnp.allclose(out_b, ref_b, atol=1e-2, rtol=1e-2), "tiled-batch mismatch"

    # Ragged batch: partial last tile exercises masked edge-block writeback.
    rag_batch = 300
    xr = jax.random.uniform(kx3, (rag_batch, in_features), jnp.float32)
    out_r = jax.block_until_ready(fwd(xr, *params))
    ref_r = _reference(xr, w1, b1, w2, b2)
    assert out_r.shape == (rag_batch, num_classes), out_r.shape
    assert jnp.allclose(out_r, ref_r, atol=1e-2, rtol=1e-2), "ragged-batch mismatch"

    print("KERNEL_OK")
</pallas_src>

<mosaic_0001>
module attributes {stable_mosaic.version = 11 : i64} {
  func.func @_mlp_kernel(%arg0: memref<2x784xf32, #tpu.memory_space<vmem>>, %arg1: memref<784x256xbf16, #tpu.memory_space<vmem>>, %arg2: memref<1x256xf32, #tpu.memory_space<vmem>>, %arg3: memref<256x128xbf16, #tpu.memory_space<vmem>>, %arg4: memref<1x128xf32, #tpu.memory_space<vmem>>, %arg5: memref<2x128xbf16, #tpu.memory_space<vmem>>) attributes {dimension_semantics = [], scalar_prefetch = 0 : i64, scratch_operands = 0 : i64, tpu.core_type = #tpu.core_type<tc>} {
    %c0 = arith.constant 0 : index
    %c0_0 = arith.constant 0 : index
    %0 = vector.load %arg0[%c0, %c0_0] : memref<2x784xf32, #tpu.memory_space<vmem>>, vector<2x784xf32>
    %1 = arith.truncf %0 : vector<2x784xf32> to vector<2x784xbf16>
    %c0_1 = arith.constant 0 : index
    %c0_2 = arith.constant 0 : index
    %2 = vector.load %arg1[%c0_1, %c0_2] : memref<784x256xbf16, #tpu.memory_space<vmem>>, vector<784x256xbf16>
    %cst = arith.constant dense<0.000000e+00> : vector<2x256xf32>
    %3 = tpu.matmul %1, %2, %cst {dimension_numbers = #tpu.dot_dimension_numbers<[1], [0], [0], [1], [0, 0, 1, 1], [], []>} : vector<2x784xbf16>, vector<784x256xbf16>, vector<2x256xf32> -> vector<2x256xf32>
    %c0_3 = arith.constant 0 : index
    %c0_4 = arith.constant 0 : index
    %4 = vector.load %arg2[%c0_3, %c0_4] : memref<1x256xf32, #tpu.memory_space<vmem>>, vector<1x256xf32>
    %5 = vector.broadcast %4 : vector<1x256xf32> to vector<2x256xf32>
    %6 = arith.addf %3, %5 : vector<2x256xf32>
    %cst_5 = arith.constant 0.000000e+00 : f32
    %7 = vector.broadcast %cst_5 : f32 to vector<2x256xf32>
    %8 = arith.maximumf %6, %7 : vector<2x256xf32>
    %9 = arith.truncf %8 : vector<2x256xf32> to vector<2x256xbf16>
    %c0_6 = arith.constant 0 : index
    %c0_7 = arith.constant 0 : index
    %10 = vector.load %arg3[%c0_6, %c0_7] : memref<256x128xbf16, #tpu.memory_space<vmem>>, vector<256x128xbf16>
    %cst_8 = arith.constant dense<0.000000e+00> : vector<2x128xf32>
    %11 = tpu.matmul %9, %10, %cst_8 {dimension_numbers = #tpu.dot_dimension_numbers<[1], [0], [0], [1], [0, 0, 1, 1], [], []>} : vector<2x256xbf16>, vector<256x128xbf16>, vector<2x128xf32> -> vector<2x128xf32>
    %c0_9 = arith.constant 0 : index
    %c0_10 = arith.constant 0 : index
    %12 = vector.load %arg4[%c0_9, %c0_10] : memref<1x128xf32, #tpu.memory_space<vmem>>, vector<1x128xf32>
    %13 = vector.broadcast %12 : vector<1x128xf32> to vector<2x128xf32>
    %14 = arith.addf %11, %13 : vector<2x128xf32>
    %15 = arith.truncf %14 : vector<2x128xf32> to vector<2x128xbf16>
    %c0_11 = arith.constant 0 : index
    %c0_12 = arith.constant 0 : index
    %16 = vector.load %arg5[%c0_11, %c0_12] : memref<2x128xbf16, #tpu.memory_space<vmem>>, vector<2x128xbf16>
    tpu.vector_store %arg5[%c0_11, %c0_12], %15 {strides = array<i32>} : memref<2x128xbf16, #tpu.memory_space<vmem>>, vector<2x128xbf16>,
    return
  }
}

</mosaic_0001>

<bundles_post_ra>
// kernel: my_sequential_forward.1
= control target key start
LH: loop header
LB: loop body
LE: loop exit
PB: predicated region body
PF: predicated region fallthrough
CT: control target
= control target key end

     0   :  { %10 = vsyncpa [#allocation3], 0  ;;  %s1828_s0 = inlined_call_operand.hbm [shape: f32[2,784], index: 0, kind: input, shape index: {}]   ;;  %s1829_s1 = inlined_call_operand.hbm [shape: bf16[784,256], index: 1, kind: input, shape index: {}]   ;;  %s1830_s2 = inlined_call_operand.hbm [shape: f32[1,256], index: 2, kind: input, shape index: {}]   ;;  %s1831_s3 = inlined_call_operand.hbm [shape: bf16[256,128], index: 3, kind: input, shape index: {}]   ;;  %s1832_s4 = inlined_call_operand.vmem [shape: f32[1,128], index: 4, kind: input, shape index: {}]   ;;  %s1833_s5 = inlined_call_operand.vmem [shape: bf16[2,128], index: 5, kind: output, shape index: {}]  }
   0x1   :  { %11 = vsyncpa [#allocation5], 0  ;;  %s28_s20 = sshll.u32 %s1829_s1, 4  ;;  %s29_s20 = int_to_ptr.hbm [resolvable:$true] %s28_s20 }
   0x2   :  { %12 = vsyncpa [#allocation8], 0  ;;  %s1742_s21 = smov [#allocation4]   ;;  %s18_s25 = sshll.u32 %s1828_s0, 4  ;;  %s19_s25 = int_to_ptr.hbm [resolvable:$true] %s18_s25 }
   0x3   :  { %s30_s22 = sshll.u32 %s1742_s21, 4  ;;  %s1743_s26 = smov 128   ;;  %s31_s22 = int_to_ptr.vmem [resolvable:$true] %s30_s22 }
   0x4   :  { %s1744_s27 = smov 8   ;;  %s1745_s28 = smov [#allocation2]  }
   0x5   :  { %36 = dma.hbm_to_vmem [thread:$0]  %s29_s20, 12544, %s31_s22, [#allocation5], %s1743_s26, %s1743_s26, %s1744_s27  }
   0x6   :  { %s20_s29 = sshll.u32 %s1745_s28, 4  ;;  %s42_s7 = sshll.u32 %s1830_s2, 4  ;;  %s21_s29 = int_to_ptr.vmem [resolvable:$true] %s20_s29  ;;  %s43_s7 = int_to_ptr.hbm [resolvable:$true] %s42_s7 }
   0x7   :  { %23 = dma.hbm_to_vmem [thread:$0]  %s19_s25, 224, %s21_s29, [#allocation3]  }
   0x8   :  { %s52_s9 = sshll.u32 %s1831_s3, 4  ;;  %s1746_s10 = smov [#allocation6]   ;;  %s53_s9 = int_to_ptr.hbm [resolvable:$true] %s52_s9 }
   0x9   :  { %s44_s11 = sshll.u32 %s1746_s10, 4  ;;  %s1747_s0 = smov [#allocation7]   ;;  %s45_s11 = int_to_ptr.vmem [resolvable:$true] %s44_s11 }
   0xa   :  { %47 = dma.hbm_to_vmem [thread:$0]  %s43_s7, 32, %s45_s11, [#allocation5]  }
   0xb   :  { %s54_s12 = sshll.u32 %s1747_s0, 4  ;;  %s1748_s13 = smov 64   ;;  %s55_s12 = int_to_ptr.vmem [resolvable:$true] %s54_s12 }
   0xc   :  { %s1749_s14 = smov 4  }
   0xd   :  { %60 = dma.hbm_to_vmem [thread:$0]  %s53_s9, 2048, %s55_s12, [#allocation8], %s1748_s13, %s1748_s13, %s1749_s14  }
   0xe   :  { %1736 = dma.done.wait [#allocation3], 224  }
   0xf   :  { %1737 = vsyncadd [#allocation3], 4294967072 }
  0x10   :  { %1738 = dma.done.wait [#allocation5], 12576  }
  0x11   :  { %1739 = vsyncadd [#allocation5], 4294954720 }
  0x12   :  { %1740 = dma.done.wait [#allocation8], 2048  }
  0x13   :  { %1741 = vsyncadd [#allocation8], 4294965248  ;;  %v1117_v0 = vld [vmem:[#allocation4 + $0x70] sm:$0xf]  ;;  %v1532_v1 = vld [vmem:[#allocation4 + $0x74] sm:$0xf0] }
  0x14   :  { %v1245_v2 = vld [vmem:[#allocation4 + $0x170] sm:$0xf]  ;;  %v1118_v3 = vor.u32 %v1532_v1, %v1117_v0  ;;  %v1564_v4 = vld [vmem:[#allocation4 + $0x174] sm:$0xf0]  ;;  %v1109_v11 = vld [vmem:[#allocation4 + $0x60] sm:$0xf] }
  0x15   :  { %v1309_v5 = vld [vmem:[#allocation4 + $0x1f0] sm:$0xf]  ;;  %v1580_v6 = vld [vmem:[#allocation4 + $0x1f4] sm:$0xf0]  ;;  %v1246_v7 = vor.u32 %v1564_v4, %v1245_v2  ;;  %v1530_v13 = vld [vmem:[#allocation4 + $0x64] sm:$0xf0] }
  0x16   :  { %v1310_v8 = vor.u32 %v1580_v6, %v1309_v5  ;;  %v1181_v9 = vld [vmem:[#allocation4 + $0xf0] sm:$0xf]  ;;  %v1548_v10 = vld [vmem:[#allocation4 + $0xf4] sm:$0xf0]  ;;  %706 = vmatpush.bf16.msra.mxu0 %v1118_v3  ;;  %v1237_v14 = vld [vmem:[#allocation4 + $0x160] sm:$0xf]  ;;  %v1110_v16 = vor.u32 %v1530_v13, %v1109_v11 }
  0x17   :  { %v1182_v12 = vor.u32 %v1548_v10, %v1181_v9  ;;  %v1562_v15 = vld [vmem:[#allocation4 + $0x164] sm:$0xf0]  ;;  %732 = vmatpush.bf16.msra.mxu2 %v1246_v7  ;;  %v1301_v18 = vld [vmem:[#allocation4 + $0x1e0] sm:$0xf]  ;;  %v1101_v23 = vld [vmem:[#allocation4 + $0x50] sm:$0xf] }
  0x18   :  { %745 = vmatpush.bf16.msra.mxu3 %v1310_v8  ;;  %v1238_v17 = vor.u32 %v1562_v15, %v1237_v14  ;;  %v1578_v19 = vld [vmem:[#allocation4 + $0x1e4] sm:$0xf0]  ;;  %v1173_v20 = vld [vmem:[#allocation4 + $0xe0] sm:$0xf]  ;;  %v1528_v24 = vld [vmem:[#allocation4 + $0x54] sm:$0xf0] }
  0x19   :  { %719 = vmatpush.bf16.msra.mxu1 %v1182_v12  ;;  %v1302_v21 = vor.u32 %v1578_v19, %v1301_v18  ;;  %v1546_v22 = vld [vmem:[#allocation4 + $0xe4] sm:$0xf0]  ;;  %v1229_v26 = vld [vmem:[#allocation4 + $0x150] sm:$0xf]  ;;  %v1560_v27 = vld [vmem:[#allocation4 + $0x154] sm:$0xf0]  ;;  %v1102_v29 = vor.u32 %v1528_v24, %v1101_v23 }
  0x1a   :  { %v1174_v25 = vor.u32 %v1546_v22, %v1173_v20  ;;  %v1293_v28 = vld [vmem:[#allocation4 + $0x1d0] sm:$0xf]  ;;  %707 = vmatpush.bf16.msra.mxu0 %v1110_v16  ;;  %v1576_v30 = vld [vmem:[#allocation4 + $0x1d4] sm:$0xf0]  ;;  %v1230_v33 = vor.u32 %v1560_v27, %v1229_v26  ;;  %v1093_v35 = vld [vmem:[#allocation4 + $0x40] sm:$0xf] }
  0x1b   :  { %v1165_v31 = vld [vmem:[#allocation4 + $0xd0] sm:$0xf]  ;;  %v1544_v32 = vld [vmem:[#allocation4 + $0xd4] sm:$0xf0]  ;;  %733 = vmatpush.bf16.msra.mxu2 %v1238_v17  ;;  %v1294_v34 = vor.u32 %v1576_v30, %v1293_v28  ;;  %v1526_v36 = vld [vmem:[#allocation4 + $0x44] sm:$0xf0] }
  0x1c   :  { %746 = vmatpush.bf16.msra.mxu3 %v1302_v21  ;;  %v1221_v37 = vld [vmem:[#allocation4 + $0x140] sm:$0xf]  ;;  %v1166_v38 = vor.u32 %v1544_v32, %v1165_v31  ;;  %v1558_v39 = vld [vmem:[#allocation4 + $0x144] sm:$0xf0]  ;;  %v1094_v44 = vor.u32 %v1526_v36, %v1093_v35  ;;  %v1085_v47 = vld [vmem:[#allocation4 + $0x30] sm:$0xf] }
  0x1d   :  { %720 = vmatpush.bf16.msra.mxu1 %v1174_v25  ;;  %v1285_v40 = vld [vmem:[#allocation4 + $0x1c0] sm:$0xf]  ;;  %v1574_v41 = vld [vmem:[#allocation4 + $0x1c4] sm:$0xf0]  ;;  %v1222_v45 = vor.u32 %v1558_v39, %v1221_v37  ;;  %v1524_v48 = vld [vmem:[#allocation4 + $0x34] sm:$0xf0] }
  0x1e   :  { %v1157_v42 = vld [vmem:[#allocation4 + $0xc0] sm:$0xf]  ;;  %v1542_v43 = vld [vmem:[#allocation4 + $0xc4] sm:$0xf0]  ;;  %708 = vmatpush.bf16.msra.mxu0 %v1102_v29  ;;  %v1286_v46 = vor.u32 %v1574_v41, %v1285_v40  ;;  %v1213_v49 = vld [vmem:[#allocation4 + $0x130] sm:$0xf]  ;;  %v1086_v56 = vor.u32 %v1524_v48, %v1085_v47 }
  0x1f   :  { %734 = vmatpush.bf16.msra.mxu2 %v1230_v33  ;;  %v1158_v50 = vor.u32 %v1542_v43, %v1157_v42  ;;  %v1556_v51 = vld [vmem:[#allocation4 + $0x134] sm:$0xf0]  ;;  %v1277_v52 = vld [vmem:[#allocation4 + $0x1b0] sm:$0xf]  ;;  %v1077_v59 = vld [vmem:[#allocation4 + $0x20] sm:$0xf] }
  0x20   :  { %747 = vmatpush.bf16.msra.mxu3 %v1294_v34  ;;  %v1572_v53 = vld [vmem:[#allocation4 + $0x1b4] sm:$0xf0]  ;;  %v1149_v54 = vld [vmem:[#allocation4 + $0xb0] sm:$0xf]  ;;  %v1214_v57 = vor.u32 %v1556_v51, %v1213_v49  ;;  %v1522_v60 = vld [vmem:[#allocation4 + $0x24] sm:$0xf0] }
  0x21   :  { %721 = vmatpush.bf16.msra.mxu1 %v1166_v38  ;;  %v1540_v55 = vld [vmem:[#allocation4 + $0xb4] sm:$0xf0]  ;;  %v1278_v58 = vor.u32 %v1572_v53, %v1277_v52  ;;  %v1205_v61 = vld [vmem:[#allocation4 + $0x120] sm:$0xf]  ;;  %v1554_v63 = vld [vmem:[#allocation4 + $0x124] sm:$0xf0]  ;;  %v1078_v4 = vor.u32 %v1522_v60, %v1077_v59 }
  0x22   :  { %709 = vmatpush.bf16.msra.mxu0 %v1094_v44  ;;  %v1150_v62 = vor.u32 %v1540_v55, %v1149_v54  ;;  %v1269_v0 = vld [vmem:[#allocation4 + $0x1a0] sm:$0xf]  ;;  %v1570_v1 = vld [vmem:[#allocation4 + $0x1a4] sm:$0xf0]  ;;  %v1069_v5 = vld [vmem:[#allocation4 + $0x10] sm:$0xf]  ;;  %v1206_v7 = vor.u32 %v1554_v63, %v1205_v61 }
  0x23   :  { %735 = vmatpush.bf16.msra.mxu2 %v1222_v45  ;;  %v1141_v2 = vld [vmem:[#allocation4 + $0xa0] sm:$0xf]  ;;  %v1538_v3 = vld [vmem:[#allocation4 + $0xa4] sm:$0xf0]  ;;  %v1520_v6 = vld [vmem:[#allocation4 + $0x14] sm:$0xf0]  ;;  %v1270_v8 = vor.u32 %v1570_v1, %v1269_v0 }
  0x24   :  { %748 = vmatpush.bf16.msra.mxu3 %v1286_v46  ;;  %v1197_v9 = vld [vmem:[#allocation4 + $0x110] sm:$0xf]  ;;  %v1552_v10 = vld [vmem:[#allocation4 + $0x114] sm:$0xf0]  ;;  %v1142_v12 = vor.u32 %v1538_v3, %v1141_v2  ;;  %v1061_v16 = vld [vmem:[#allocation4] sm:$0xf]  ;;  %v1070_v19 = vor.u32 %v1520_v6, %v1069_v5 }
  0x25   :  { %722 = vmatpush.bf16.msra.mxu1 %v1158_v50  ;;  %v1261_v11 = vld [vmem:[#allocation4 + $0x190] sm:$0xf]  ;;  %v1568_v13 = vld [vmem:[#allocation4 + $0x194] sm:$0xf0]  ;;  %v1518_v17 = vld [vmem:[#allocation4 + $0x4] sm:$0xf0]  ;;  %v1198_v22 = vor.u32 %v1552_v10, %v1197_v9 }
  0x26   :  { %710 = vmatpush.bf16.msra.mxu0 %v1086_v56  ;;  %v1133_v14 = vld [vmem:[#allocation4 + $0x90] sm:$0xf]  ;;  %v1536_v15 = vld [vmem:[#allocation4 + $0x94] sm:$0xf0]  ;;  %v1189_v20 = vld [vmem:[#allocation4 + $0x100] sm:$0xf]  ;;  %v1262_v23 = vor.u32 %v1568_v13, %v1261_v11  ;;  %v1062_v34 = vor.u32 %v1518_v17, %v1061_v16 }
  0x27   :  { %736 = vmatpush.bf16.msra.mxu2 %v1214_v57  ;;  %v80_v18 = vld [vmem:[#allocation2] sm:$0xff]  ;;  %v1550_v21 = vld [vmem:[#allocation4 + $0x104] sm:$0xf0]  ;;  %v1253_v24 = vld [vmem:[#allocation4 + $0x180] sm:$0xf]  ;;  %v1134_v27 = vor.u32 %v1536_v15, %v1133_v14  ;;  %vm702_vm0 = vcmask 130048  }
  0x28   :  { %749 = vmatpush.bf16.msra.mxu3 %v1278_v58  ;;  %84 = vst [vmem:[#allocation1] ss:$4 sm:$0xff] %v80_v18  ;;  %v1566_v25 = vld [vmem:[#allocation4 + $0x184] sm:$0xf0]  ;;  %v1373_v26 = vld [vmem:[#allocation4 + $0x270] sm:$0xf]  ;;  %v1190_v38 = vor.u32 %v1550_v21, %v1189_v20 }
  0x29   :  { %723 = vmatpush.bf16.msra.mxu1 %v1150_v62  ;;  %v1596_v28 = vld [vmem:[#allocation4 + $0x274] sm:$0xf0]  ;;  %v1531_v29 = vld [vmem:[#allocation4 + $0x74] sm:$0xf]  ;;  %v1119_v30 = vld [vmem:[#allocation4 + $0x78] sm:$0xf0]  ;;  %v1254_v39 = vor.u32 %v1566_v25, %v1253_v24 }
  0x2a   :  { %711 = vmatpush.bf16.msra.mxu0 %v1078_v4  ;;  %v1125_v31 = vld [vmem:[#allocation4 + $0x80] sm:$0xf]  ;;  %v1534_v32 = vld [vmem:[#allocation4 + $0x84] sm:$0xf0]  ;;  %v1437_v33 = vld [vmem:[#allocation4 + $0x2f0] sm:$0xf]  ;;  %v1374_v43 = vor.u32 %v1596_v28, %v1373_v26  ;;  %v1122_v44 = vor.u32 %v1531_v29, %v1119_v30 }
  0x2b   :  { %737 = vmatpush.bf16.msra.mxu2 %v1206_v7  ;;  %v1612_v35 = vld [vmem:[#allocation4 + $0x2f4] sm:$0xf0]  ;;  %v1445_v36 = vld [vmem:[#allocation4 + $0x300] sm:$0xf]  ;;  %v1614_v37 = vld [vmem:[#allocation4 + $0x304] sm:$0xf0]  ;;  %v1126_v48 = vor.u32 %v1534_v32, %v1125_v31 }
  0x2c   :  { %750 = vmatpush.bf16.msra.mxu3 %v1270_v8  ;;  %v1547_v40 = vld [vmem:[#allocation4 + $0xf4] sm:$0xf]  ;;  %v1183_v41 = vld [vmem:[#allocation4 + $0xf8] sm:$0xf0]  ;;  %v1365_v42 = vld [vmem:[#allocation4 + $0x260] sm:$0xf]  ;;  %v1446_v50 = vor.u32 %v1614_v37, %v1445_v36  ;;  %v1438_v53 = vor.u32 %v1612_v35, %v1437_v33 }
  0x2d   :  { %724 = vmatpush.bf16.msra.mxu1 %v1142_v12  ;;  %v1594_v45 = vld [vmem:[#allocation4 + $0x264] sm:$0xf0]  ;;  %v1529_v46 = vld [vmem:[#allocation4 + $0x64] sm:$0xf]  ;;  %v1111_v47 = vld [vmem:[#allocation4 + $0x68] sm:$0xf0]  ;;  %v1186_v56 = vor.u32 %v1547_v40, %v1183_v41 }
  0x2e   :  { %712 = vmatpush.bf16.msra.mxu0 %v1070_v19  ;;  %v1429_v54 = vld [vmem:[#allocation4 + $0x2e0] sm:$0xf]  ;;  %v1610_v57 = vld [vmem:[#allocation4 + $0x2e4] sm:$0xf0]  ;;  %v1366_v60 = vor.u32 %v1594_v45, %v1365_v42  ;;  %v1114_v61 = vor.u32 %v1529_v46, %v1111_v47  ;;  %v1545_v62 = vld [vmem:[#allocation4 + $0xe4] sm:$0xf] }
  0x2f   :  { %738 = vmatpush.bf16.msra.mxu2 %v1198_v22  ;;  %v89_v49 = vld.sshfl [vmem:[#allocation1 + $0x10] sm:$0xff pattern:$0x73625140]  ;;  %v87_v51 = vld.sshfl [vmem:[#allocation1] sm:$0xff pattern:$0x73625140]  ;;  %v1430_v6 = vor.u32 %v1610_v57, %v1429_v54 }
  0x30   :  { %751 = vmatpush.bf16.msra.mxu3 %v1262_v23  ;;  %v1792_v52 = vpack.c.bf16 %v89_v49, %v89_v49  ;;  %v90_v55 = vld.sshfl [vmem:[#allocation1 + $0x18] sm:$0xff pattern:$0x73625140]  ;;  %v1794_v58 = vpack.c.bf16 %v87_v51, %v87_v51  ;;  %v88_v59 = vld.sshfl [vmem:[#allocation1 + $0x8] sm:$0xff pattern:$0x73625140] }
  0x31   :  { %725 = vmatpush.bf16.msra.mxu1 %v1134_v27  ;;  %v1175_v63 = vld [vmem:[#allocation4 + $0xe8] sm:$0xf0]  ;;  %v1357_v0 = vld [vmem:[#allocation4 + $0x250] sm:$0xf]  ;;  %v1592_v1 = vld [vmem:[#allocation4 + $0x254] sm:$0xf0]  ;;  %v1796_v4 = vpack.c.bf16 %v90_v55, %v90_v55  ;;  %v1798_v5 = vpack.c.bf16 %v88_v59, %v88_v59 }
  0x32   :  { %713 = vmatpush.bf16.msra.mxu0 %v1062_v34  ;;  %v1527_v2 = vld [vmem:[#allocation4 + $0x54] sm:$0xf]  ;;  %v1103_v3 = vld [vmem:[#allocation4 + $0x58] sm:$0xf0]  ;;  %v1178_v7 = vor.u32 %v1545_v62, %v1175_v63  ;;  %v1421_v8 = vld [vmem:[#allocation4 + $0x2d0] sm:$0xf]  ;;  %v1358_v10 = vor.u32 %v1592_v1, %v1357_v0 }
  0x33   :  { %739 = vmatpush.bf16.msra.mxu2 %v1190_v38  ;;  %v1608_v9 = vld [vmem:[#allocation4 + $0x2d4] sm:$0xf0]  ;;  %v1106_v11 = vor.u32 %v1527_v2, %v1103_v3  ;;  %v1543_v12 = vld [vmem:[#allocation4 + $0xd4] sm:$0xf]  ;;  %v1167_v13 = vld [vmem:[#allocation4 + $0xd8] sm:$0xf0] }
  0x34   :  { %752 = vmatpush.bf16.msra.mxu3 %v1254_v39  ;;  %v1349_v14 = vld [vmem:[#allocation4 + $0x240] sm:$0xf]  ;;  %v1590_v15 = vld [vmem:[#allocation4 + $0x244] sm:$0xf0]  ;;  %v1525_v16 = vld [vmem:[#allocation4 + $0x44] sm:$0xf]  ;;  %v1422_v18 = vor.u32 %v1608_v9, %v1421_v8  ;;  %v1170_v19 = vor.u32 %v1543_v12, %v1167_v13 }
  0x35   :  { %726 = vmatpush.bf16.msra.mxu1 %v1126_v48  ;;  %714 = vmatmul.bf16.vlgmr.msra.gmra.mxu0 %v1794_v58  ;;  %v1095_v17 = vld [vmem:[#allocation4 + $0x48] sm:$0xf0]  ;;  %v1413_v20 = vld [vmem:[#allocation4 + $0x2c0] sm:$0xf]  ;;  %v1606_v21 = vld [vmem:[#allocation4 + $0x2c4] sm:$0xf0]  ;;  %v1350_v22 = vor.u32 %v1590_v15, %v1349_v14 }
  0x36   :  { %758 = vmatpush.bf16.msrb.mxu0 %v1374_v43  ;;  %740 = vmatmul.bf16.vlgmr.msra.gmra.mxu2 %v1792_v52  ;;  %v1098_v23 = vor.u32 %v1525_v16, %v1095_v17  ;;  %v1541_v24 = vld [vmem:[#allocation4 + $0xc4] sm:$0xf]  ;;  %v1159_v25 = vld [vmem:[#allocation4 + $0xc8] sm:$0xf0]  ;;  %v1341_v26 = vld [vmem:[#allocation4 + $0x230] sm:$0xf]  ;;  %v1414_v30 = vor.u32 %v1606_v21, %v1413_v20 }
  0x37   :  { %791 = vmatpush.bf16.msrb.mxu2 %v1446_v50  ;;  %753 = vmatmul.bf16.vlgmr.msra.gmra.mxu3 %v1796_v4  ;;  %v1588_v27 = vld [vmem:[#allocation4 + $0x234] sm:$0xf0]  ;;  %v1523_v28 = vld [vmem:[#allocation4 + $0x34] sm:$0xf]  ;;  %v1087_v29 = vld [vmem:[#allocation4 + $0x38] sm:$0xf0]  ;;  %v1162_v32 = vor.u32 %v1541_v24, %v1159_v25 }
  0x38   :  { %797 = vmatpush.bf16.msrb.mxu3 %v1122_v44  ;;  %727 = vmatmul.bf16.vlgmr.msra.gmra.mxu1 %v1798_v5  ;;  %v1405_v31 = vld [vmem:[#allocation4 + $0x2b0] sm:$0xf]  ;;  %v1604_v33 = vld [vmem:[#allocation4 + $0x2b4] sm:$0xf0]  ;;  %v1539_v34 = vld [vmem:[#allocation4 + $0xb4] sm:$0xf]  ;;  %v1342_v36 = vor.u32 %v1588_v27, %v1341_v26  ;;  %v1090_v37 = vor.u32 %v1523_v28, %v1087_v29 }
  0x39   :  { %771 = vmatpush.bf16.msrb.mxu1 %v1438_v53  ;;  %v81_v35 = vld [vmem:[#allocation2 + $0x8] sm:$0x3f]  ;;  %v1333_v39 = vld [vmem:[#allocation4 + $0x220] sm:$0xf]  ;;  %v1586_v40 = vld [vmem:[#allocation4 + $0x224] sm:$0xf0]  ;;  %v1406_v43 = vor.u32 %v1604_v33, %v1405_v31 }
  0x3a   :  { %759 = vmatpush.bf16.msrb.mxu0 %v1366_v60  ;;  %v1151_v38 = vld [vmem:[#allocation4 + $0xb8] sm:$0xf0]  ;;  %86 = vst [vmem:[#allocation1 + $0x20] ss:$4 sm:$0xff] %v81_v35  ;;  %v1521_v41 = vld [vmem:[#allocation4 + $0x24] sm:$0xf]  ;;  %v1334_v48 = vor.u32 %v1586_v40, %v1333_v39 }
  0x3b   :  { %810 = vmatpush.bf16.msra.mxu2 %v1186_v56  ;;  %v1079_v42 = vld [vmem:[#allocation4 + $0x28] sm:$0xf0]  ;;  %v1154_v44 = vor.u32 %v1539_v34, %v1151_v38  ;;  %v1397_v45 = vld [vmem:[#allocation4 + $0x2a0] sm:$0xf]  ;;  %v1602_v46 = vld [vmem:[#allocation4 + $0x2a4] sm:$0xf0] }
  0x3c   :  { %798 = vmatpush.bf16.msrb.mxu3 %v1114_v61  ;;  %v1537_v47 = vld [vmem:[#allocation4 + $0xa4] sm:$0xf]  ;;  %v1082_v49 = vor.u32 %v1521_v41, %v1079_v42  ;;  %v1143_v50 = vld [vmem:[#allocation4 + $0xa8] sm:$0xf0]  ;;  %v1325_v51 = vld [vmem:[#allocation4 + $0x210] sm:$0xf]  ;;  %v1398_v57 = vor.u32 %v1602_v46, %v1397_v45 }
  0x3d   :  { %772 = vmatpush.bf16.msrb.mxu1 %v1430_v6  ;;  %v1584_v53 = vld [vmem:[#allocation4 + $0x214] sm:$0xf0]  ;;  %v1519_v54 = vld [vmem:[#allocation4 + $0x14] sm:$0xf]  ;;  %v1071_v55 = vld [vmem:[#allocation4 + $0x18] sm:$0xf0]  ;;  %v1146_v62 = vor.u32 %v1537_v47, %v1143_v50 }
  0x3e   :  { %760 = vmatpush.bf16.msrb.mxu0 %v1358_v10  ;;  %v1389_v56 = vld [vmem:[#allocation4 + $0x290] sm:$0xf]  ;;  %v1600_v59 = vld [vmem:[#allocation4 + $0x294] sm:$0xf0]  ;;  %v1535_v60 = vld [vmem:[#allocation4 + $0x94] sm:$0xf]  ;;  %v1326_v1 = vor.u32 %v1584_v53, %v1325_v51  ;;  %v1074_v2 = vor.u32 %v1519_v54, %v1071_v55 }
  0x3f   :  { %811 = vmatpush.bf16.msra.mxu2 %v1178_v7  ;;  %v1135_v61 = vld [vmem:[#allocation4 + $0x98] sm:$0xf0]  ;;  %v1317_v63 = vld [vmem:[#allocation4 + $0x200] sm:$0xf]  ;;  %v1582_v3 = vld [vmem:[#allocation4 + $0x204] sm:$0xf0]  ;;  %v1390_v12 = vor.u32 %v1600_v59, %v1389_v56 }
  0x40   :  { %799 = vmatpush.bf16.msrb.mxu3 %v1106_v11  ;;  %v1517_v7 = vld [vmem:[#allocation4 + $0x4] sm:$0xf]  ;;  %v1063_v8 = vld [vmem:[#allocation4 + $0x8] sm:$0xf0]  ;;  %v1563_v9 = vld [vmem:[#allocation4 + $0x174] sm:$0xf]  ;;  %v1138_v16 = vor.u32 %v1535_v60, %v1135_v61  ;;  %v1318_v20 = vor.u32 %v1582_v3, %v1317_v63 }
  0x41   :  { %773 = vmatpush.bf16.msrb.mxu1 %v1422_v18  ;;  %v93_v0 = vld.sshfl [vmem:[#allocation1 + $0x30] sm:$0xff pattern:$0x73625140]  ;;  %v1595_v11 = vld [vmem:[#allocation4 + $0x274] sm:$0xf]  ;;  %v1066_v21 = vor.u32 %v1517_v7, %v1063_v8 }
  0x42   :  { %761 = vmatpush.bf16.msrb.mxu0 %v1350_v22  ;;  %v1804_v6 = vpack.c.bf16 %v93_v0, %v93_v0  ;;  %v1247_v10 = vld [vmem:[#allocation4 + $0x178] sm:$0xf0]  ;;  %v1381_v14 = vld [vmem:[#allocation4 + $0x280] sm:$0xf]  ;;  %v1598_v15 = vld [vmem:[#allocation4 + $0x284] sm:$0xf0] }
  0x43   :  { %812 = vmatpush.bf16.msra.mxu2 %v1170_v19  ;;  %v1375_v13 = vld [vmem:[#allocation4 + $0x278] sm:$0xf0]  ;;  %v1533_v17 = vld [vmem:[#allocation4 + $0x84] sm:$0xf]  ;;  %v1127_v18 = vld [vmem:[#allocation4 + $0x88] sm:$0xf0]  ;;  %v1250_v24 = vor.u32 %v1563_v9, %v1247_v10  ;;  %v1382_v29 = vor.u32 %v1598_v15, %v1381_v14 }
  0x44   :  { %800 = vmatpush.bf16.msrb.mxu3 %v1098_v23  ;;  %v1579_v19 = vld [vmem:[#allocation4 + $0x1f4] sm:$0xf]  ;;  %v91_v22 = vld.sshfl [vmem:[#allocation1 + $0x20] sm:$0xff pattern:$0x73625140]  ;;  %v1378_v25 = vor.u32 %v1595_v11, %v1375_v13  ;;  %v1130_v33 = vor.u32 %v1533_v17, %v1127_v18 }
  0x45   :  { %774 = vmatpush.bf16.msrb.mxu1 %v1414_v30  ;;  %v1311_v23 = vld [vmem:[#allocation4 + $0x1f8] sm:$0xf0]  ;;  %v1611_v26 = vld [vmem:[#allocation4 + $0x2f4] sm:$0xf]  ;;  %v1561_v28 = vld [vmem:[#allocation4 + $0x164] sm:$0xf] }
  0x46   :  { %762 = vmatpush.bf16.msrb.mxu0 %v1342_v36  ;;  %1451 = vmatmul.msk.bf16.vlgmr.msrb.gmra.mxu2 %vm702_vm0, %v1804_v6  ;;  %v1439_v27 = vld [vmem:[#allocation4 + $0x2f8] sm:$0xf0]  ;;  %v92_v30 = vld.sshfl [vmem:[#allocation1 + $0x28] sm:$0xff pattern:$0x73625140]  ;;  %v1314_v36 = vor.u32 %v1579_v19, %v1311_v23 }
  0x47   :  { %813 = vmatpush.bf16.msra.mxu2 %v1162_v32  ;;  %v1239_v31 = vld [vmem:[#allocation4 + $0x168] sm:$0xf0]  ;;  %v1808_v32 = vpack.c.bf16 %v91_v22, %v91_v22  ;;  %v1593_v34 = vld [vmem:[#allocation4 + $0x264] sm:$0xf]  ;;  %v1810_v39 = vpack.c.bf16 %v92_v30, %v92_v30  ;;  %v1559_v45 = vld [vmem:[#allocation4 + $0x154] sm:$0xf] }
  0x48   :  { %801 = vmatpush.bf16.msrb.mxu3 %v1090_v37  ;;  %v1367_v35 = vld [vmem:[#allocation4 + $0x268] sm:$0xf0]  ;;  %v1442_v37 = vor.u32 %v1611_v26, %v1439_v27  ;;  %v1577_v38 = vld [vmem:[#allocation4 + $0x1e4] sm:$0xf]  ;;  %v1242_v40 = vor.u32 %v1561_v28, %v1239_v31  ;;  %v1231_v46 = vld [vmem:[#allocation4 + $0x158] sm:$0xf0] }
  0x49   :  { %775 = vmatpush.bf16.msrb.mxu1 %v1406_v43  ;;  %v1303_v41 = vld [vmem:[#allocation4 + $0x1e8] sm:$0xf0]  ;;  %v1609_v42 = vld [vmem:[#allocation4 + $0x2e4] sm:$0xf]  ;;  %v1591_v47 = vld [vmem:[#allocation4 + $0x254] sm:$0xf]  ;;  %v1234_v53 = vor.u32 %v1559_v45, %v1231_v46 }
  0x4a   :  { %763 = vmatpush.bf16.msrb.mxu0 %v1334_v48  ;;  %v1431_v43 = vld [vmem:[#allocation4 + $0x2e8] sm:$0xf0]  ;;  %v1359_v48 = vld [vmem:[#allocation4 + $0x258] sm:$0xf0]  ;;  %v1575_v51 = vld [vmem:[#allocation4 + $0x1d4] sm:$0xf] }
  0x4b   :  { %814 = vmatpush.bf16.msra.mxu2 %v1154_v44  ;;  %v1370_v44 = vor.u32 %v1593_v34, %v1367_v35  ;;  %v1434_v50 = vor.u32 %v1609_v42, %v1431_v43  ;;  %v1295_v54 = vld [vmem:[#allocation4 + $0x1d8] sm:$0xf0]  ;;  %v1607_v55 = vld [vmem:[#allocation4 + $0x2d4] sm:$0xf]  ;;  %v1557_v59 = vld [vmem:[#allocation4 + $0x144] sm:$0xf] }
  0x4c   :  { %802 = vmatpush.bf16.msrb.mxu3 %v1082_v49  ;;  %v1306_v49 = vor.u32 %v1577_v38, %v1303_v41  ;;  %v1423_v56 = vld [vmem:[#allocation4 + $0x2d8] sm:$0xf0]  ;;  %v1223_v60 = vld [vmem:[#allocation4 + $0x148] sm:$0xf0]  ;;  %v1589_v61 = vld [vmem:[#allocation4 + $0x244] sm:$0xf]  ;;  %v1298_v63 = vor.u32 %v1575_v51, %v1295_v54 }
  0x4d   :  { %776 = vmatpush.bf16.msrb.mxu1 %v1398_v57  ;;  %v1362_v57 = vor.u32 %v1591_v47, %v1359_v48  ;;  %v1426_v0 = vor.u32 %v1607_v55, %v1423_v56  ;;  %v1226_v3 = vor.u32 %v1557_v59, %v1223_v60  ;;  %v1605_v7 = vld [vmem:[#allocation4 + $0x2c4] sm:$0xf]  ;;  %v1415_v8 = vld [vmem:[#allocation4 + $0x2c8] sm:$0xf0]  ;;  %v1555_v10 = vld [vmem:[#allocation4 + $0x134] sm:$0xf] }
  0x4e   :  { %764 = vmatpush.bf16.msrb.mxu0 %v1326_v1  ;;  %v1573_v1 = vld [vmem:[#allocation4 + $0x1c4] sm:$0xf]  ;;  %v1215_v11 = vld [vmem:[#allocation4 + $0x138] sm:$0xf0]  ;;  %v1418_v14 = vor.u32 %v1605_v7, %v1415_v8  ;;  %v1571_v15 = vld [vmem:[#allocation4 + $0x1b4] sm:$0xf] }
  0x4f   :  { %815 = vmatpush.bf16.msra.mxu2 %v1146_v62  ;;  %v1351_v62 = vld [vmem:[#allocation4 + $0x248] sm:$0xf0]  ;;  %v1343_v13 = vld [vmem:[#allocation4 + $0x238] sm:$0xf0]  ;;  %v1603_v18 = vld [vmem:[#allocation4 + $0x2b4] sm:$0xf] }
  0x50   :  { %803 = vmatpush.bf16.msrb.mxu3 %v1074_v2  ;;  %v1287_v2 = vld [vmem:[#allocation4 + $0x1c8] sm:$0xf0]  ;;  %v1354_v9 = vor.u32 %v1589_v61, %v1351_v62  ;;  %v1279_v17 = vld [vmem:[#allocation4 + $0x1b8] sm:$0xf0]  ;;  %v1585_v23 = vld [vmem:[#allocation4 + $0x224] sm:$0xf] }
  0x51   :  { %777 = vmatpush.bf16.msrb.mxu1 %v1390_v12  ;;  %v1587_v12 = vld [vmem:[#allocation4 + $0x234] sm:$0xf]  ;;  %v1407_v19 = vld [vmem:[#allocation4 + $0x2b8] sm:$0xf0]  ;;  %v1207_v22 = vld [vmem:[#allocation4 + $0x128] sm:$0xf0] }
  0x52   :  { %765 = vmatpush.bf16.msrb.mxu0 %v1318_v20  ;;  %v1346_v20 = vor.u32 %v1587_v12, %v1343_v13  ;;  %v1569_v26 = vld [vmem:[#allocation4 + $0x1a4] sm:$0xf]  ;;  %v1271_v28 = vld [vmem:[#allocation4 + $0x1a8] sm:$0xf0]  ;;  %v1199_v34 = vld [vmem:[#allocation4 + $0x118] sm:$0xf0] }
  0x53   :  { %816 = vmatpush.bf16.msra.mxu2 %v1138_v16  ;;  %v1218_v16 = vor.u32 %v1555_v10, %v1215_v11  ;;  %v1399_v30 = vld [vmem:[#allocation4 + $0x2a8] sm:$0xf0]  ;;  %v1583_v35 = vld [vmem:[#allocation4 + $0x214] sm:$0xf]  ;;  %v1263_v42 = vld [vmem:[#allocation4 + $0x198] sm:$0xf0] }
  0x54   :  { %804 = vmatpush.bf16.msrb.mxu3 %v1066_v21  ;;  %v1553_v21 = vld [vmem:[#allocation4 + $0x124] sm:$0xf]  ;;  %v1599_v43 = vld [vmem:[#allocation4 + $0x294] sm:$0xf]  ;;  %v1191_v47 = vld [vmem:[#allocation4 + $0x108] sm:$0xf0] }
  0x55   :  { %778 = vmatpush.bf16.msrb.mxu1 %v1382_v29  ;;  %766 = vmatmul.bf16.vlgmr.msrb.gmra.mxu0 %v1808_v32  ;;  %v1210_v27 = vor.u32 %v1553_v21, %v1207_v22  ;;  %v1601_v29 = vld [vmem:[#allocation4 + $0x2a4] sm:$0xf]  ;;  %v1447_v51 = vld [vmem:[#allocation4 + $0x308] sm:$0xf0]  ;;  %v1619_v7 = vld [vmem:[#allocation7 + $0x20] sm:$0xff] }
  0x56   :  { %823 = vmatpush.bf16.msra.mxu0 %v1250_v24  ;;  %v1282_v24 = vor.u32 %v1571_v15, %v1279_v17  ;;  %v1402_v38 = vor.u32 %v1601_v29, %v1399_v30  ;;  %v1549_v46 = vld [vmem:[#allocation4 + $0x104] sm:$0xf]  ;;  %v1383_v61 = vld [vmem:[#allocation4 + $0x288] sm:$0xf0]  ;;  %v1628_v21 = vld [vmem:[#allocation7 + $0x68] sm:$0xff] }
  0x57   :  { %817 = vmatpush.bf16.msra.mxu2 %v1130_v33  ;;  %805 = vmatmul.bf16.vlgmr.msrb.gmra.mxu3 %v1794_v58  ;;  %v1290_v58 = vor.u32 %v1573_v1, %v1287_v2  ;;  %v1551_v33 = vld [vmem:[#allocation4 + $0x114] sm:$0xf]  ;;  %v1581_v48 = vld [vmem:[#allocation4 + $0x204] sm:$0xf]  ;;  %v1194_v55 = vor.u32 %v1549_v46, %v1191_v47  ;;  %v1622_v1 = vld [vmem:[#allocation7 + $0x38] sm:$0xff] }
  0x58   :  { %849 = vmatpush.bf16.msra.mxu3 %v1378_v25  ;;  %779 = vmatmul.bf16.vlgmr.msrb.gmra.mxu1 %v1810_v39  ;;  %v1410_v25 = vor.u32 %v1603_v18, %v1407_v19  ;;  %v1202_v41 = vor.u32 %v1551_v33, %v1199_v34  ;;  %v1565_v56 = vld [vmem:[#allocation4 + $0x184] sm:$0xf]  ;;  %v1618_v8 = vld [vmem:[#allocation7 + $0x18] sm:$0xff] }
  0x59   :  { %836 = vmatpush.bf16.msra.mxu1 %v1314_v36  ;;  %v1327_v36 = vld [vmem:[#allocation4 + $0x218] sm:$0xf0]  ;;  %v1597_v60 = vld [vmem:[#allocation4 + $0x284] sm:$0xf] }
  0x5a   :  { %824 = vmatpush.bf16.msra.mxu0 %v1242_v40  ;;  %818 = vmatmul.bf16.vlgmr.msra.gmra.mxu2 %v1798_v5  ;;  %v1335_v5 = vld [vmem:[#allocation4 + $0x228] sm:$0xf0]  ;;  %v1567_v40 = vld [vmem:[#allocation4 + $0x194] sm:$0xf]  ;;  %v1330_v45 = vor.u32 %v1583_v35, %v1327_v36  ;;  %v1621_v2 = vld [vmem:[#allocation7 + $0x30] sm:$0xff] }
  0x5b   :  { %862 = vmatpush.bf16.msrb.mxu2 %v1442_v37  ;;  %v1338_v31 = vor.u32 %v1585_v23, %v1335_v5  ;;  %v1274_v37 = vor.u32 %v1569_v26, %v1271_v28  ;;  %v1626_v28 = vld [vmem:[#allocation7 + $0x58] sm:$0xff]  ;;  %v1625_v34 = vld [vmem:[#allocation7 + $0x50] sm:$0xff] }
  0x5c   :  { %850 = vmatpush.bf16.msra.mxu3 %v1370_v44  ;;  %v1391_v44 = vld [vmem:[#allocation4 + $0x298] sm:$0xf0] }
  0x5d   :  { %837 = vmatpush.bf16.msra.mxu1 %v1306_v49  ;;  %v1319_v49 = vld [vmem:[#allocation4 + $0x208] sm:$0xf0]  ;;  %v1394_v54 = vor.u32 %v1599_v43, %v1391_v44 }
  0x5e   :  { %825 = vmatpush.bf16.msra.mxu0 %v1234_v53  ;;  %v1266_v53 = vor.u32 %v1567_v40, %v1263_v42  ;;  %v1322_v59 = vor.u32 %v1581_v48, %v1319_v49 }
  0x5f   :  { %863 = vmatpush.bf16.msrb.mxu2 %v1434_v50  ;;  %v1613_v50 = vld [vmem:[#allocation4 + $0x304] sm:$0xf] }
  0x60   :  { %851 = vmatpush.bf16.msra.mxu3 %v1362_v57  ;;  %v1255_v57 = vld [vmem:[#allocation4 + $0x188] sm:$0xf0]  ;;  %v1450_v62 = vor.u32 %v1613_v50, %v1447_v51 }
  0x61   :  { %838 = vmatpush.bf16.msra.mxu1 %v1298_v63  ;;  %v1258_v63 = vor.u32 %v1565_v56, %v1255_v57 }
  0x62   :  { %826 = vmatpush.bf16.msra.mxu0 %v1226_v3  ;;  %v1620_v3 = vld [vmem:[#allocation7 + $0x28] sm:$0xff] }
  0x63   :  { %864 = vmatpush.bf16.msrb.mxu2 %v1426_v0  ;;  %v1386_v0 = vor.u32 %v1597_v60, %v1383_v61 }
  0x64   :  { %852 = vmatpush.bf16.msra.mxu3 %v1354_v9 }
  0x65   :  { %839 = vmatpush.bf16.msra.mxu1 %v1290_v58  ;;  %v1630_v58 = vld [vmem:[#allocation7 + $0x78] sm:$0xff] }
  0x66   :  { %827 = vmatpush.bf16.msra.mxu0 %v1218_v16  ;;  %v1629_v16 = vld [vmem:[#allocation7 + $0x70] sm:$0xff] }
  0x67   :  { %865 = vmatpush.bf16.msrb.mxu2 %v1418_v14 }
  0x68   :  { %853 = vmatpush.bf16.msra.mxu3 %v1346_v20 }
  0x69   :  { %840 = vmatpush.bf16.msra.mxu1 %v1282_v24  ;;  %v1627_v24 = vld [vmem:[#allocation7 + $0x60] sm:$0xff] }
  0x6a   :  { %828 = vmatpush.bf16.msra.mxu0 %v1210_v27 }
  0x6b   :  { %866 = vmatpush.bf16.msrb.mxu2 %v1410_v25 }
  0x6c   :  { %854 = vmatpush.bf16.msra.mxu3 %v1338_v31 }
  0x6d   :  { %841 = vmatpush.bf16.msra.mxu1 %v1274_v37 }
  0x6e   :  { %829 = vmatpush.bf16.msra.mxu0 %v1202_v41  ;;  %v1623_v41 = vld [vmem:[#allocation7 + $0x40] sm:$0xff] }
  0x6f   :  { %867 = vmatpush.bf16.msrb.mxu2 %v1402_v38  ;;  %v1624_v38 = vld [vmem:[#allocation7 + $0x48] sm:$0xff] }
  0x70   :  { %855 = vmatpush.bf16.msra.mxu3 %v1330_v45 }
  0x71   :  { %842 = vmatpush.bf16.msra.mxu1 %v1266_v53 }
  0x72   :  { %830 = vmatpush.bf16.msra.mxu0 %v1194_v55 }
  0x73   :  { %868 = vmatpush.bf16.msrb.mxu2 %v1394_v54 }
  0x74   :  { %856 = vmatpush.bf16.msra.mxu3 %v1322_v59 }
  0x75   :  { %843 = vmatpush.bf16.msra.mxu1 %v1258_v63  ;;  %831 = vmatmul.bf16.vlgmr.msra.gmra.mxu0 %v1792_v52  ;;  %v1617_v52 = vld [vmem:[#allocation7 + $0x10] sm:$0xff] }
  0x76   :  { %882 = vmatpush.bf16.msrb.mxu0 %v1450_v62 }
  0x77   :  { %857 = vmatmul.bf16.vlgmr.msra.gmra.mxu3 %v1808_v32  ;;  %869 = vmatpush.bf16.msrb.mxu2 %v1386_v0  ;;  %v1616_v32 = vld [vmem:[#allocation7 + $0x8] sm:$0xff] }
  0x78   :  { %844 = vmatmul.bf16.vlgmr.msra.gmra.mxu1 %v1796_v4  ;;  %1037 = vmatpush.bf16.msrb.mxu3 %v1630_v58 }
  0x79   :  { %1024 = vmatpush.bf16.msrb.mxu1 %v1622_v1 }
  0x7a   :  { %870 = vmatmul.bf16.vlgmr.msrb.gmra.mxu2 %v1810_v39  ;;  %v1615_v39 = vld [vmem:[#allocation7] sm:$0xff] }
  0x7c   :  { %1038 = vmatpush.bf16.msrb.mxu3 %v1629_v16 }
  0x7d   :  { %1025 = vmatpush.bf16.msrb.mxu1 %v1621_v2 }
  0x80   :  { %1039 = vmatpush.bf16.msrb.mxu3 %v1628_v21 }
  0x81   :  { %1026 = vmatpush.bf16.msrb.mxu1 %v1620_v3 }
  0x84   :  { %1040 = vmatpush.bf16.msrb.mxu3 %v1627_v24 }
  0x85   :  { %1452 = vmatmul.msk.bf16.vlgmr.msrb.gmra.mxu0 %vm702_vm0, %v1804_v6  ;;  %1027 = vmatpush.bf16.msrb.mxu1 %v1619_v7  ;;  %v206_v6 = vld [vmem:[#allocation6] sm:$0x3]  ;;  %v1639_v7 = vld [vmem:[%s1832_s4] ss:$0 sm:$0xff] }
  0x86   :  { %v208_v14 = vperm.slane %v206_v6, 0  ;;  %v209_v44 = vperm.slane %v206_v6, 1 }
  0x88   :  { %1041 = vmatpush.bf16.msrb.mxu3 %v1626_v28 }
  0x89   :  { %1028 = vmatpush.bf16.msrb.mxu1 %v1618_v8 }
  0x8c   :  { %1042 = vmatpush.bf16.msrb.mxu3 %v1625_v34 }
  0x8d   :  { %1029 = vmatpush.bf16.msrb.mxu1 %v1617_v52 }
  0x90   :  { %1043 = vmatpush.bf16.msrb.mxu3 %v1624_v38 }
  0x91   :  { %1030 = vmatpush.bf16.msrb.mxu1 %v1616_v32 }
  0x94   :  { %1044 = vmatpush.bf16.msrb.mxu3 %v1623_v41 }
  0x95   :  { %1031 = vmatpush.bf16.msrb.mxu1 %v1615_v39 }
  0xb2   :  { %v715_v9 = vpop.f32.mrf.mxu0 }
  0xb3   :  { %v716_v17 = vadd.f32 %v715_v9, %v208_v14 }
  0xb5   :  { %v728_v4 = vpop.f32.mrf.mxu1 }
  0xb6   :  { %v729_v19 = vadd.f32 %v728_v4, %v716_v17 }
  0xb9   :  { %v741_v10 = vpop.f32.mrf.mxu2 }
  0xba   :  { %v754_v11 = vpop.f32.mrf.mxu3  ;;  %v717_v12 = vpop.f32.mrf.mxu0  ;;  %v742_v20 = vadd.f32 %v741_v10, %v729_v19 }
  0xbc   :  { %v755_v23 = vadd.f32 %v754_v11, %v742_v20 }
  0xbd   :  { %v730_v13 = vpop.f32.mrf.mxu1 }
  0xc1   :  { %v743_v15 = vpop.f32.mrf.mxu2 }
  0xc2   :  { %v756_v18 = vpop.f32.mrf.mxu3 }
  0xc9   :  { %v793_v22 = vpop.f32.mrf.mxu2 }
  0xd1   :  { %v795_v30 = vpop.f32.mrf.mxu2 }
  0xd2   :  { %v767_v5 = vpop.f32.mrf.mxu0 }
  0xd3   :  { %v768_v25 = vadd.f32 %v767_v5, %v755_v23 }
  0xd5   :  { %v780_v26 = vpop.f32.mrf.mxu1 }
  0xd6   :  { %v781_v27 = vadd.f32 %v780_v26, %v768_v25 }
  0xd8   :  { %v794_v29 = vadd.f32 %v793_v22, %v781_v27 }
  0xda   :  { %v888_v31 = vmax.f32 %v794_v29, 0.0  ;;  %v769_v33 = vpop.f32.mrf.mxu0  ;;  %v806_v36 = vpop.f32.mrf.mxu3 }
  0xdb   :  { %v807_v45 = vadd.f32 %v806_v36, %v209_v44 }
  0xdc   :  { %v890_v35 = vpack.c.bf16 %v888_v31, %v888_v31 }
  0xdd   :  { %v782_v37 = vpop.f32.mrf.mxu1  ;;  %v819_v40 = vpop.f32.mrf.mxu2 }
  0xde   :  { %1032 = vmatmul.bf16.vlgmr.msrb.gmra.mxu1 %v890_v35  ;;  %v820_v47 = vadd.f32 %v819_v40, %v807_v45 }
  0xe2   :  { %v808_v42 = vpop.f32.mrf.mxu3 }
  0xe5   :  { %v821_v43 = vpop.f32.mrf.mxu2 }
  0xf2   :  { %v832_v46 = vpop.f32.mrf.mxu0 }
  0xf3   :  { %v833_v49 = vadd.f32 %v832_v46, %v820_v47 }
  0xf5   :  { %v845_v48 = vpop.f32.mrf.mxu1 }
  0xf6   :  { %v846_v53 = vadd.f32 %v845_v48, %v833_v49 }
  0xfa   :  { %v858_v50 = vpop.f32.mrf.mxu3  ;;  %v834_v51 = vpop.f32.mrf.mxu0 }
  0xfb   :  { %v859_v55 = vadd.f32 %v858_v50, %v846_v53 }
  0xfd   :  { %v871_v54 = vpop.f32.mrf.mxu2  ;;  %v847_v56 = vpop.f32.mrf.mxu1 }
  0xfe   :  { %v872_v57 = vadd.f32 %v871_v54, %v859_v55 }
 0x102   :  { %v860_v59 = vpop.f32.mrf.mxu3  ;;  %v884_v60 = vpop.f32.mrf.mxu0 }
 0x103   :  { %v885_v61 = vadd.f32 %v884_v60, %v872_v57 }
 0x105   :  { %v873_v62 = vpop.f32.mrf.mxu2  ;;  %v889_v63 = vmax.f32 %v885_v61, 0.0 }
 0x107   :  { %v891_v0 = vpack.c.bf16 %v889_v63, %v889_v63 }
 0x109   :  { %1045 = vmatmul.bf16.vlgmr.msrb.gmra.mxu3 %v891_v0 }
 0x10a   :  { %v886_v1 = vpop.f32.mrf.mxu0 }
 0x15b   :  { %v1033_v2 = vpop.f32.mrf.mxu1 }
 0x15c   :  { %v1034_v8 = vadd.f32 %v1639_v7, %v1033_v2 }
 0x163   :  { %v1035_v3 = vpop.f32.mrf.mxu1 }
 0x18c   :  { %v1046_v52 = vpop.f32.mrf.mxu3 }
 0x18d   :  { %v1047_v32 = vadd.f32 %v1046_v52, %v1034_v8 }
 0x18f   :  { %v1050_v9 = vpack.c.bf16 %v1047_v32, %v1047_v32 }
 0x191   :  { %1051 = vst [vmem:[%s1833_s5] sm:$0x1] %v1050_v9 }
 0x194   :  { %v1048_v4 = vpop.f32.mrf.mxu3 }
 0x195   :  { %1056 = vsyncpa [#allocation3], 1 }
 0x196   :  { %1057 = vsyncpa [#allocation5], 1 }
 0x197   :  { %1058 = vsyncpa [#allocation8], 1 }

</bundles_post_ra>
